<compile_context>
chip_gen: v6e
topology: v6e:2x2x1
jax: 0.10.0
libtpu: 0.0.40
codegen_flags: <defaults>
</compile_context>

<pallas_src>
import functools

import jax
import jax.numpy as jnp
from jax import lax
from jax.experimental import pallas as pl
from jax.experimental.pallas import tpu as pltpu

_MIB = 1024 * 1024


def _round_up(x, m):
    return (x + m - 1) // m * m


def _vmem_capacity_bytes():
    # Generation-aware VMEM capacity (64 MiB v7x, 128 MiB v5e/v6e); conservative fallback.
    try:
        info = pltpu.get_tpu_info()
        cap = getattr(info, "vmem_capacity_bytes", None)
        if cap:
            return int(cap)
    except Exception:
        pass
    return 64 * _MIB


def _make_logits_kernel(*, has_bias, multi_k, tk, soft_cap, scale):
    def epilogue(x):
        if soft_cap is not None:
            # fold /soft_cap and *scale into two constants: one EUP tanh + one VPU mul
            x = jnp.tanh(x * (1.0 / soft_cap)) * (soft_cap * scale)
        elif scale != 1.0:
            x = x * scale
        return x

    if multi_k:
        def kernel(*refs):
            if has_bias:
                h_ref, w_ref, b_ref, o_ref, acc_ref = refs
            else:
                h_ref, w_ref, o_ref, acc_ref = refs
                b_ref = None

            k = pl.program_id(2)

            @pl.when(k == 0)
            def _():
                if has_bias:
                    acc_ref[...] = jnp.broadcast_to(
                        b_ref[...].astype(jnp.float32), acc_ref.shape)
                else:
                    acc_ref[...] = jnp.zeros_like(acc_ref)

            # resident hidden block [tm, D]: take this step's K-slice
            off = pl.multiple_of(k * tk, tk)
            h = h_ref[:, pl.ds(off, tk)]

            # h @ w.T against the native-layout [tn, tk] weight tile on the MXU.
            # (Verified to lower without a per-tile XLU transpose; see notes.)
            acc_ref[...] += lax.dot_general(
                h, w_ref[...],
                dimension_numbers=(((1,), (1,)), ((), ())),
                preferred_element_type=jnp.float32)

            @pl.when(k == pl.num_programs(2) - 1)
            def _():
                o_ref[...] = epilogue(acc_ref[...]).astype(o_ref.dtype)
    else:
        # tk == D: single K step, no accumulator scratch, no pl.when phases.
        def kernel(*refs):
            if has_bias:
                h_ref, w_ref, b_ref, o_ref = refs
            else:
                h_ref, w_ref, o_ref = refs
                b_ref = None

            x = lax.dot_general(
                h_ref[...], w_ref[...],
                dimension_numbers=(((1,), (1,)), ((), ())),
                preferred_element_type=jnp.float32)
            if has_bias:
                x = x + b_ref[...].astype(jnp.float32)
            o_ref[...] = epilogue(x).astype(o_ref.dtype)

    return kernel


def logits_processor(
    hidden_states,            # [T_total, D]
    lm_head_weight,           # [V, D]  (nn.Embedding layout; store in bf16 for production)
    selected_token_indices,   # [T] int32
    embedding_bias=None,      # [V] or None
    *,
    org_vocab_size=None,
    scale=1.0,
    soft_cap=None,
    logits_as_input=False,
    max_tk=None,              # testing knob: cap the K tile (forces the multi-K kernel)
):
    if logits_as_input:
        # logits passed straight through; only soft_cap / scale apply (plain JAX glue)
        logits = hidden_states
        if soft_cap is not None:
            logits = jnp.tanh(logits * (1.0 / soft_cap)) * (soft_cap * scale)
        elif scale != 1.0:
            logits = logits * scale
        return logits

    V, D = lm_head_weight.shape
    Vorg = int(org_vocab_size or V)
    has_bias = embedding_bias is not None

    # --- glue: prune rows; compute dtype == weight dtype (no in-call weight cast) ----
    # TODO(synk): optionally fuse the row gather into the kernel via
    # PrefetchScalarGridSpec(num_scalar_prefetch=1) + pl.Element-indexed hidden spec.
    pruned = jnp.take(hidden_states, selected_token_indices, axis=0)   # [T, D]
    out_dtype = hidden_states.dtype
    comp_dtype = lm_head_weight.dtype   # bf16 production path: weight already stored bf16
    if pruned.dtype != comp_dtype:
        pruned = pruned.astype(comp_dtype)   # small [T, D] cast only; weight is untouched
    comp_bytes = jnp.dtype(comp_dtype).itemsize
    out_bytes = jnp.dtype(out_dtype).itemsize

    # --- token padding (sublane-native for both compute and output dtypes) ----------
    sub_tab = {4: 8, 2: 16, 1: 32}
    sub = max(sub_tab.get(comp_bytes, 8), sub_tab.get(out_bytes, 8))
    T = pruned.shape[0]
    T_pad = _round_up(T, sub)
    if T_pad != T:
        pruned = jnp.pad(pruned, ((0, T_pad - T), (0, 0)))

    # --- generation-aware VMEM budget ------------------------------------------------
    cap = _vmem_capacity_bytes()
    budget = max(cap - 28 * _MIB, 24 * _MIB)     # ~36 MiB on v7x, ~100 MiB on v5e/v6e

    # --- K-tile candidates: prefer the largest divisor of D (tk == D kills the K axis)
    tk_cands = []
    for c in (D, 4096, 2048, 1024, 512, 256, 128):
        if c <= D and D % c == 0 and c not in tk_cands:
            tk_cands.append(c)
    if max_tk is not None:
        capped = [c for c in tk_cands if c <= max_tk]
        tk_cands = capped or [tk_cands[-1]]
    tk_min = tk_cands[-1]

    def vmem_usage(tm_, tn_, tk_):
        hidden = 2 * tm_ * D * comp_bytes        # resident hidden block (double-buffered)
        wbuf = 2 * tn_ * tk_ * comp_bytes        # weight stream (double-buffered)
        obuf = 2 * tm_ * tn_ * out_bytes         # output tiles (double-buffered)
        acc = 0 if tk_ == D else tm_ * tn_ * 4   # f32 accumulator only when K is tiled
        bias = (2 * tn_ * 4) if has_bias else 0
        return hidden + wbuf + obuf + acc + bias

    # --- token tile: whole pruned matrix resident when it fits the budget ------------
    tm_cands = [T_pad] + [m for m in (1024, 512, 256, 128, 64, 32, 16, 8)
                          if m % sub == 0 and m < T_pad]
    tm = tm_cands[-1]
    for m in tm_cands:
        if vmem_usage(m, 128, tk_min) <= budget:
            tm = m
            break
    if T_pad % tm:
        T_pad = _round_up(T_pad, tm)
        pruned = jnp.pad(pruned, ((0, T_pad - pruned.shape[0]), (0, 0)))

    # --- K tile: largest candidate that fits with the minimum vocab tile -------------
    tk = tk_cands[-1]
    for c in tk_cands:
        if vmem_usage(tm, 128, c) <= budget:
            tk = c
            break

    # --- vocab tile: lane-dense, grown last (acc/output VMEM scale with tn, not tk) --
    tn = min(2048, _round_up(Vorg, 128))
    while tn > 128 and vmem_usage(tm, tn, tk) > budget:
        tn -= 128
    Vorg_pad = _round_up(Vorg, tn)

    # --- weight / bias prep (no transpose, no [:Vorg] copy) --------------------------
    # Grid is bounded to Vorg_pad // tn vocab tiles, so padded-vocab rows past Vorg_pad
    # are never read; the weight is only copied if the last tile extends past V.
    weight = lm_head_weight
    if Vorg_pad > V:
        weight = jnp.pad(weight, ((0, Vorg_pad - V), (0, 0)))

    args = [pruned, weight]
    if has_bias:
        bias = jnp.zeros((1, Vorg_pad), jnp.float32)
        nb = min(Vorg, V, embedding_bias.shape[0])
        bias = bias.at[0, :nb].set(embedding_bias[:nb].astype(jnp.float32))
        args.append(bias)

    num_i = T_pad // tm
    num_j = Vorg_pad // tn
    num_k = D // tk
    multi_k = num_k > 1

    # Megacore (v7x): put the larger parallel axis first so both TCs stream weights.
    vocab_major = num_j >= num_i
    if vocab_major:
        grid = (num_j, num_i, num_k)
        h_map = lambda j, i, k: (i, 0)
        w_map = lambda j, i, k: (j, k)
        b_map = lambda j, i, k: (0, j)
        o_map = lambda j, i, k: (i, j)
    else:
        grid = (num_i, num_j, num_k)
        h_map = lambda i, j, k: (i, 0)
        w_map = lambda i, j, k: (j, k)
        b_map = lambda i, j, k: (0, j)
        o_map = lambda i, j, k: (i, j)

    in_specs = [
        pl.BlockSpec((tm, D), h_map),        # resident hidden block (constant over j,k)
        pl.BlockSpec((tn, tk), w_map),       # native-layout [V, D] weight stream
    ]
    if has_bias:
        in_specs.append(pl.BlockSpec((1, tn), b_map))

    scratch_shapes = [pltpu.VMEM((tm, tn), jnp.float32)] if multi_k else []

    usage = vmem_usage(tm, tn, tk)
    vmem_limit = int(min(cap - 8 * _MIB, max(usage + 16 * _MIB, 32 * _MIB)))

    kernel = _make_logits_kernel(has_bias=has_bias, multi_k=multi_k,
                                 tk=tk, soft_cap=soft_cap, scale=scale)

    bytes_accessed = (Vorg_pad * D * comp_bytes * num_i      # weight stream (per token tile)
                      + T_pad * D * comp_bytes               # hidden
                      + T_pad * Vorg_pad * out_bytes         # output
                      + (Vorg_pad * 4 if has_bias else 0))
    cost = pl.CostEstimate(
        flops=2 * T_pad * D * Vorg_pad,
        transcendentals=(T_pad * Vorg_pad) if soft_cap is not None else 0,
        bytes_accessed=int(bytes_accessed))

    out = pl.pallas_call(
        kernel,
        out_shape=jax.ShapeDtypeStruct((T_pad, Vorg_pad), out_dtype),
        grid_spec=pltpu.PrefetchScalarGridSpec(
            num_scalar_prefetch=0,
            grid=grid,
            in_specs=in_specs,
            out_specs=pl.BlockSpec((tm, tn), o_map),
            scratch_shapes=scratch_shapes),
        compiler_params=pltpu.CompilerParams(
            dimension_semantics=("parallel", "parallel", "arbitrary"),
            vmem_limit_bytes=vmem_limit),
        cost_estimate=cost,
    )(*args)

    return out[:T, :Vorg]


def _reference(hidden_states, lm_head_weight, idx, embedding_bias, vorg, scale, soft_cap):
    # Pure-JAX reference matching the kernel's compute dtype (weight dtype).
    p = hidden_states[idx].astype(lm_head_weight.dtype).astype(jnp.float32)
    w = lm_head_weight.astype(jnp.float32)
    r = p @ w.T
    if embedding_bias is not None:
        r = r + embedding_bias.astype(jnp.float32)[None, :]
    r = r[:, :vorg]
    if soft_cap is not None:
        r = jnp.tanh(r / soft_cap) * soft_cap
    if scale != 1.0:
        r = r * scale
    return r.astype(hidden_states.dtype)


if __name__ == "__main__":
    key = jax.random.PRNGKey(0)
    k1, k2, k3 = jax.random.split(key, 3)

    # small shapes consistent with the module
    T_total, D = 16, 256          # prompt tokens, hidden size
    V, Vorg = 320, 300            # padded vocab, original vocab
    T_sel = 8                     # selected (sampled) token positions
    scale = 0.9
    soft_cap = 30.0

    hidden_states = jax.random.normal(k1, (T_total, D), jnp.float32)
    lm_head_weight = jax.random.normal(k2, (V, D), jnp.float32) * 0.05
    embedding_bias = jax.random.normal(k3, (V,), jnp.float32) * 0.01
    selected_token_indices = jnp.arange(0, T_total, 2, dtype=jnp.int32)  # 8 idx

    # --- check 1: f32 weights, bias, single-K (tk == D) path -------------------------
    out1 = jax.block_until_ready(logits_processor(
        hidden_states, lm_head_weight, selected_token_indices, embedding_bias,
        org_vocab_size=Vorg, scale=scale, soft_cap=soft_cap))
    ref1 = _reference(hidden_states, lm_head_weight, selected_token_indices,
                      embedding_bias, Vorg, scale, soft_cap)
    assert out1.shape == (T_sel, Vorg)
    assert jnp.allclose(out1, ref1, atol=1e-4, rtol=1e-4), float(jnp.max(jnp.abs(out1 - ref1)))

    # --- check 2: no bias, multi-K accumulator path (max_tk forces K tiling) ---------
    out2 = jax.block_until_ready(logits_processor(
        hidden_states, lm_head_weight, selected_token_indices, None,
        org_vocab_size=Vorg, scale=scale, soft_cap=soft_cap, max_tk=128))
    ref2 = _reference(hidden_states, lm_head_weight, selected_token_indices,
                      None, Vorg, scale, soft_cap)
    assert jnp.allclose(out2, ref2, atol=1e-4, rtol=1e-4), float(jnp.max(jnp.abs(out2 - ref2)))

    # --- check 3: bf16 production path (weight stored in bf16, no in-call cast) ------
    w_bf16 = lm_head_weight.astype(jnp.bfloat16)
    out3 = jax.block_until_ready(logits_processor(
        hidden_states, w_bf16, selected_token_indices, embedding_bias,
        org_vocab_size=Vorg, scale=scale, soft_cap=soft_cap))
    ref3 = _reference(hidden_states, w_bf16, selected_token_indices,
                      embedding_bias, Vorg, scale, soft_cap)
    assert jnp.allclose(out3, ref3, atol=2e-3, rtol=2e-3), float(jnp.max(jnp.abs(out3 - ref3)))

    print("KERNEL_OK")
</pallas_src>

<mosaic_0001>
module attributes {stable_mosaic.version = 11 : i64} {
  func.func @kernel(%arg0: i32, %arg1: i32, %arg2: i32, %arg3: memref<8x256xf32, #tpu.memory_space<vmem>>, %arg4: memref<384x256xf32, #tpu.memory_space<vmem>>, %arg5: memref<1x384xf32, #tpu.memory_space<vmem>>, %arg6: memref<8x384xf32, #tpu.memory_space<vmem>>) attributes {dimension_semantics = [#tpu.dimension_semantics<parallel>, #tpu.dimension_semantics<parallel>, #tpu.dimension_semantics<arbitrary>], iteration_bounds = array<i64: 1, 1, 1>, scalar_prefetch = 0 : i64, scratch_operands = 0 : i64, tpu.core_type = #tpu.core_type<tc>, window_params = [{transform_indices = @transform_0, window_bounds = array<i64: 8, 256>}, {transform_indices = @transform_1, window_bounds = array<i64: 384, 256>}, {transform_indices = @transform_2, window_bounds = array<i64: 1, 384>}, {transform_indices = @transform_3, window_bounds = array<i64: 8, 384>}]} {
    %c0 = arith.constant 0 : index
    %c0_0 = arith.constant 0 : index
    %0 = vector.load %arg3[%c0, %c0_0] : memref<8x256xf32, #tpu.memory_space<vmem>>, vector<8x256xf32>
    %c0_1 = arith.constant 0 : index
    %c0_2 = arith.constant 0 : index
    %1 = vector.load %arg4[%c0_1, %c0_2] : memref<384x256xf32, #tpu.memory_space<vmem>>, vector<384x256xf32>
    %cst = arith.constant dense<0.000000e+00> : vector<8x384xf32>
    %2 = tpu.matmul %0, %1, %cst {dimension_numbers = #tpu.dot_dimension_numbers<[1], [1], [0], [0], [0, 0, 1, 0], [], []>} : vector<8x256xf32>, vector<384x256xf32>, vector<8x384xf32> -> vector<8x384xf32>
    %c0_3 = arith.constant 0 : index
    %c0_4 = arith.constant 0 : index
    %3 = vector.load %arg5[%c0_3, %c0_4] : memref<1x384xf32, #tpu.memory_space<vmem>>, vector<1x384xf32>
    %4 = vector.broadcast %3 : vector<1x384xf32> to vector<8x384xf32>
    %5 = arith.addf %2, %4 : vector<8x384xf32>
    %cst_5 = arith.constant 0.0333333351 : f32
    %6 = vector.broadcast %cst_5 : f32 to vector<8x384xf32>
    %7 = arith.mulf %5, %6 : vector<8x384xf32>
    %8 = math.tanh %7 : vector<8x384xf32>
    %cst_6 = arith.constant 2.700000e+01 : f32
    %9 = vector.broadcast %cst_6 : f32 to vector<8x384xf32>
    %10 = arith.mulf %8, %9 : vector<8x384xf32>
    %c0_7 = arith.constant 0 : index
    %c0_8 = arith.constant 0 : index
    %11 = vector.load %arg6[%c0_7, %c0_8] : memref<8x384xf32, #tpu.memory_space<vmem>>, vector<8x384xf32>
    tpu.vector_store %arg6[%c0_7, %c0_8], %10 {strides = array<i32>} : memref<8x384xf32, #tpu.memory_space<vmem>>, vector<8x384xf32>,
    return
  }
  func.func @transform_0(%arg0: i32, %arg1: i32, %arg2: i32) -> (i32, i32) {
    %c0_i32 = arith.constant 0 : i32
    %c0_i32_0 = arith.constant 0 : i32
    return %arg1, %c0_i32 : i32, i32
  }
  func.func @transform_1(%arg0: i32, %arg1: i32, %arg2: i32) -> (i32, i32) {
    %c0_i32 = arith.constant 0 : i32
    return %arg0, %arg2 : i32, i32
  }
  func.func @transform_2(%arg0: i32, %arg1: i32, %arg2: i32) -> (i32, i32) {
    %c0_i32 = arith.constant 0 : i32
    %c0_i32_0 = arith.constant 0 : i32
    return %c0_i32, %arg0 : i32, i32
  }
  func.func @transform_3(%arg0: i32, %arg1: i32, %arg2: i32) -> (i32, i32) {
    %c0_i32 = arith.constant 0 : i32
    return %arg1, %arg0 : i32, i32
  }
}

</mosaic_0001>

<bundles_post_ra>
// kernel: tpu_custom_call.1
= control target key start
LH: loop header
LB: loop body
LE: loop exit
PB: predicated region body
PF: predicated region fallthrough
CT: control target
= control target key end

     0   :  { %8 = vsyncpa [#allocation3], 0  ;;  %s439_s0 = inlined_call_operand.hbm [shape: f32[8,256], index: 0, kind: input, shape index: {}]   ;;  %s440_s1 = inlined_call_operand.hbm [shape: f32[384,256], index: 1, kind: input, shape index: {}]   ;;  %s441_s2 = inlined_call_operand.vmem [shape: f32[1,384], index: 2, kind: input, shape index: {}]   ;;  %s442_s3 = inlined_call_operand.hbm [shape: f32[8,384], index: 3, kind: output, shape index: {}]  }
   0x1   :  { %9 = vsyncpa [#allocation6], 0 }
   0x2   :  { %10 = vsyncpa [#allocation4], 0  ;;  %s402_s12 = smov [#allocation2]   ;;  %s403_s14 = smov [#allocation5]  }
   0x3   :  { %s17_s13 = sshll.u32 %s402_s12, 4  ;;  %s26_s15 = sshll.u32 %s403_s14, 4  ;;  %s18_s13 = int_to_ptr.vmem [resolvable:$true] %s17_s13  ;;  %s27_s15 = int_to_ptr.vmem [resolvable:$true] %s26_s15 }
   0x4   :  { %s344_s16 = scalar_lea.vmem %s18_s13, 256  ;;  %p349_p1 = scmp.lt.s32.totalorder %s18_s13, %s18_s13 }
   0x5   :  { %p345_p0 = scmp.ne.s32.totalorder %s18_s13, %s344_s16  ;;  %p350_p2 = scmp.lt.s32.totalorder %s344_s16, %s344_s16 }
   0x7   :  { %p351_p3 = por %p350_p2, %p349_p1 }
   0x9   :  { %p352_p4 = pnand %p351_p3, %p345_p0 }
   0xb   :  { %355 = shalt.err (!%p352_p4)
}
   0xc   :  { %20 = dma.hbm_to_vmem [thread:$0]  %s439_s0, 256, %s18_s13, [#allocation3]  }
   0xd   :  { %s364_s19 = scalar_lea.vmem %s27_s15, 12288  ;;  %p369_p6 = scmp.lt.s32.totalorder %s27_s15, %s27_s15 }
   0xe   :  { %p365_p5 = scmp.ne.s32.totalorder %s27_s15, %s364_s19  ;;  %p370_p7 = scmp.lt.s32.totalorder %s364_s19, %s364_s19 }
  0x10   :  { %p371_p8 = por %p370_p7, %p369_p6 }
  0x12   :  { %p372_p9 = pnand %p371_p8, %p365_p5 }
  0x14   :  { %375 = shalt.err (!%p372_p9)
}
  0x15   :  { %s404_s20 = smov 256   ;;  %s405_s21 = smov 16  }
  0x16   :  { %32 = dma.hbm_to_vmem [thread:$0]  %s440_s1, 12288, %s27_s15, [#allocation6], %s404_s20, %s404_s20, %s405_s21  }
  0x17   :  { %396 = dma.done.wait [#allocation3], 256  }
  0x18   :  { %397 = vsyncadd [#allocation3], 4294967040 }
  0x19   :  { %398 = dma.done.wait [#allocation6], 12288  }
  0x1a   :  { %399 = vsyncadd [#allocation6], 4294955008  ;;  %v74_v0 = vld [vmem:[#allocation5 + $0xf8] sm:$0xff]  ;;  %v73_v1 = vld [vmem:[#allocation5 + $0xf0] sm:$0xff] }
  0x1b   :  { %v72_v2 = vld [vmem:[#allocation5 + $0xe8] sm:$0xff]  ;;  %156 = vmatprep.subr.mxu0 %v74_v0  ;;  %v71_v3 = vld [vmem:[#allocation5 + $0xe0] sm:$0xff]  ;;  %v70_v4 = vld [vmem:[#allocation5 + $0xd8] sm:$0xff] }
  0x1c   :  { %157 = vmatpush1.xpose.msra.mxu0 %v73_v1  ;;  %v69_v5 = vld [vmem:[#allocation5 + $0xd0] sm:$0xff]  ;;  %v68_v6 = vld [vmem:[#allocation5 + $0xc8] sm:$0xff]  ;;  %v67_v7 = vld [vmem:[#allocation5 + $0xc0] sm:$0xff] }
  0x1d   :  { %158 = vmatprep.subr.mxu0 %v72_v2  ;;  %v138_v8 = vld [vmem:[#allocation5 + $0x2f8] sm:$0xff]  ;;  %v137_v9 = vld [vmem:[#allocation5 + $0x2f0] sm:$0xff]  ;;  %v136_v11 = vld [vmem:[#allocation5 + $0x2e8] sm:$0xff] }
  0x1e   :  { %v66_v10 = vld [vmem:[#allocation5 + $0xb8] sm:$0xff]  ;;  %227 = vmatprep.subr.mxu1 %v138_v8  ;;  %v135_v12 = vld [vmem:[#allocation5 + $0x2e0] sm:$0xff]  ;;  %v65_v13 = vld [vmem:[#allocation5 + $0xb0] sm:$0xff] }
  0x1f   :  { %228 = vmatpush1.xpose.msra.mxu1 %v137_v9  ;;  %v134_v14 = vld [vmem:[#allocation5 + $0x2d8] sm:$0xff]  ;;  %v64_v15 = vld [vmem:[#allocation5 + $0xa8] sm:$0xff]  ;;  %v133_v16 = vld [vmem:[#allocation5 + $0x2d0] sm:$0xff] }
  0x20   :  { %159 = vmatpush1.xpose.msra.mxu0 %v71_v3  ;;  %229 = vmatprep.subr.mxu1 %v136_v11  ;;  %v63_v17 = vld [vmem:[#allocation5 + $0xa0] sm:$0xff]  ;;  %v132_v18 = vld [vmem:[#allocation5 + $0x2c8] sm:$0xff]  ;;  %v62_v19 = vld [vmem:[#allocation5 + $0x98] sm:$0xff] }
  0x21   :  { %160 = vmatprep.subr.mxu0 %v70_v4  ;;  %v131_v20 = vld [vmem:[#allocation5 + $0x2c0] sm:$0xff]  ;;  %v61_v21 = vld [vmem:[#allocation5 + $0x90] sm:$0xff]  ;;  %v130_v22 = vld [vmem:[#allocation5 + $0x2b8] sm:$0xff] }
  0x22   :  { %v60_v23 = vld [vmem:[#allocation5 + $0x88] sm:$0xff]  ;;  %v129_v24 = vld [vmem:[#allocation5 + $0x2b0] sm:$0xff]  ;;  %v59_v25 = vld [vmem:[#allocation5 + $0x80] sm:$0xff] }
  0x23   :  { %230 = vmatpush1.xpose.msra.mxu1 %v135_v12  ;;  %v128_v26 = vld [vmem:[#allocation5 + $0x2a8] sm:$0xff]  ;;  %v58_v27 = vld [vmem:[#allocation5 + $0x78] sm:$0xff]  ;;  %v127_v28 = vld [vmem:[#allocation5 + $0x2a0] sm:$0xff] }
  0x24   :  { %161 = vmatpush1.xpose.msra.mxu0 %v69_v5  ;;  %231 = vmatprep.subr.mxu1 %v134_v14  ;;  %v57_v29 = vld [vmem:[#allocation5 + $0x70] sm:$0xff]  ;;  %v126_v30 = vld [vmem:[#allocation5 + $0x298] sm:$0xff]  ;;  %v56_v31 = vld [vmem:[#allocation5 + $0x68] sm:$0xff] }
  0x25   :  { %162 = vmatprep.subr.mxu0 %v68_v6  ;;  %v42_v32 = vld [vmem:[#allocation2 + $0x8] sm:$0xff]  ;;  %v125_v33 = vld [vmem:[#allocation5 + $0x290] sm:$0xff]  ;;  %v55_v34 = vld [vmem:[#allocation5 + $0x60] sm:$0xff] }
  0x26   :  { %220 = vmatprep.mubr.f32.mxu0 %v42_v32  ;;  %v124_v35 = vld [vmem:[#allocation5 + $0x288] sm:$0xff]  ;;  %291 = vmatprep.mubr.f32.mxu1 %v42_v32  ;;  %v54_v36 = vld [vmem:[#allocation5 + $0x58] sm:$0xff]  ;;  %v123_v37 = vld [vmem:[#allocation5 + $0x280] sm:$0xff] }
  0x27   :  { %232 = vmatpush1.xpose.msra.mxu1 %v133_v16  ;;  %v53_v38 = vld [vmem:[#allocation5 + $0x50] sm:$0xff]  ;;  %v122_v39 = vld [vmem:[#allocation5 + $0x278] sm:$0xff]  ;;  %v52_v40 = vld [vmem:[#allocation5 + $0x48] sm:$0xff] }
  0x28   :  { %163 = vmatpush1.xpose.msra.mxu0 %v67_v7  ;;  %233 = vmatprep.subr.mxu1 %v132_v18  ;;  %v121_v41 = vld [vmem:[#allocation5 + $0x270] sm:$0xff]  ;;  %v51_v42 = vld [vmem:[#allocation5 + $0x40] sm:$0xff]  ;;  %v120_v43 = vld [vmem:[#allocation5 + $0x268] sm:$0xff] }
  0x29   :  { %164 = vmatprep.subr.mxu0 %v66_v10  ;;  %v50_v44 = vld [vmem:[#allocation5 + $0x38] sm:$0xff]  ;;  %v119_v45 = vld [vmem:[#allocation5 + $0x260] sm:$0xff]  ;;  %v49_v46 = vld [vmem:[#allocation5 + $0x30] sm:$0xff] }
  0x2a   :  { %v118_v47 = vld [vmem:[#allocation5 + $0x258] sm:$0xff]  ;;  %v48_v48 = vld [vmem:[#allocation5 + $0x28] sm:$0xff]  ;;  %v117_v49 = vld [vmem:[#allocation5 + $0x250] sm:$0xff] }
  0x2b   :  { %234 = vmatpush1.xpose.msra.mxu1 %v131_v20  ;;  %v47_v50 = vld [vmem:[#allocation5 + $0x20] sm:$0xff]  ;;  %v116_v51 = vld [vmem:[#allocation5 + $0x248] sm:$0xff]  ;;  %v46_v52 = vld [vmem:[#allocation5 + $0x18] sm:$0xff] }
  0x2c   :  { %165 = vmatpush1.xpose.msra.mxu0 %v65_v13  ;;  %235 = vmatprep.subr.mxu1 %v130_v22  ;;  %v115_v53 = vld [vmem:[#allocation5 + $0x240] sm:$0xff]  ;;  %v45_v54 = vld [vmem:[#allocation5 + $0x10] sm:$0xff]  ;;  %v114_v55 = vld [vmem:[#allocation5 + $0x238] sm:$0xff] }
  0x2d   :  { %166 = vmatprep.subr.mxu0 %v64_v15  ;;  %v44_v56 = vld [vmem:[#allocation5 + $0x8] sm:$0xff]  ;;  %v113_v57 = vld [vmem:[#allocation5 + $0x230] sm:$0xff]  ;;  %v43_v58 = vld [vmem:[#allocation5] sm:$0xff] }
  0x2e   :  { %v112_v59 = vld [vmem:[#allocation5 + $0x228] sm:$0xff]  ;;  %v106_v60 = vld [vmem:[#allocation5 + $0x1f8] sm:$0xff]  ;;  %v111_v61 = vld [vmem:[#allocation5 + $0x220] sm:$0xff] }
  0x2f   :  { %236 = vmatpush1.xpose.msra.mxu1 %v129_v24  ;;  %v105_v62 = vld [vmem:[#allocation5 + $0x1f0] sm:$0xff]  ;;  %v110_v63 = vld [vmem:[#allocation5 + $0x218] sm:$0xff]  ;;  %v104_v0 = vld [vmem:[#allocation5 + $0x1e8] sm:$0xff] }
  0x30   :  { %167 = vmatpush1.xpose.msra.mxu0 %v63_v17  ;;  %237 = vmatprep.subr.mxu1 %v128_v26  ;;  %v109_v1 = vld [vmem:[#allocation5 + $0x210] sm:$0xff]  ;;  %v103_v2 = vld [vmem:[#allocation5 + $0x1e0] sm:$0xff]  ;;  %v108_v3 = vld [vmem:[#allocation5 + $0x208] sm:$0xff] }
  0x31   :  { %168 = vmatprep.subr.mxu0 %v62_v19  ;;  %v102_v4 = vld [vmem:[#allocation5 + $0x1d8] sm:$0xff]  ;;  %v107_v5 = vld [vmem:[#allocation5 + $0x200] sm:$0xff]  ;;  %v101_v6 = vld [vmem:[#allocation5 + $0x1d0] sm:$0xff] }
  0x32   :  { %v100_v7 = vld [vmem:[#allocation5 + $0x1c8] sm:$0xff]  ;;  %v41_v8 = vld [vmem:[#allocation2] sm:$0xff]  ;;  %v99_v9 = vld [vmem:[#allocation5 + $0x1c0] sm:$0xff] }
  0x33   :  { %238 = vmatpush1.xpose.msra.mxu1 %v127_v28  ;;  %v98_v10 = vld [vmem:[#allocation5 + $0x1b8] sm:$0xff]  ;;  %v97_v11 = vld [vmem:[#allocation5 + $0x1b0] sm:$0xff]  ;;  %v96_v12 = vld [vmem:[#allocation5 + $0x1a8] sm:$0xff] }
  0x34   :  { %169 = vmatpush1.xpose.msra.mxu0 %v61_v21  ;;  %239 = vmatprep.subr.mxu1 %v126_v30  ;;  %v95_v13 = vld [vmem:[#allocation5 + $0x1a0] sm:$0xff]  ;;  %v94_v14 = vld [vmem:[#allocation5 + $0x198] sm:$0xff]  ;;  %v93_v15 = vld [vmem:[#allocation5 + $0x190] sm:$0xff] }
  0x35   :  { %170 = vmatprep.subr.mxu0 %v60_v23  ;;  %v92_v16 = vld [vmem:[#allocation5 + $0x188] sm:$0xff]  ;;  %v91_v17 = vld [vmem:[#allocation5 + $0x180] sm:$0xff]  ;;  %v90_v18 = vld [vmem:[#allocation5 + $0x178] sm:$0xff] }
  0x36   :  { %v89_v19 = vld [vmem:[#allocation5 + $0x170] sm:$0xff]  ;;  %v88_v20 = vld [vmem:[#allocation5 + $0x168] sm:$0xff]  ;;  %v87_v21 = vld [vmem:[#allocation5 + $0x160] sm:$0xff] }
  0x37   :  { %240 = vmatpush1.xpose.msra.mxu1 %v125_v33  ;;  %v86_v22 = vld [vmem:[#allocation5 + $0x158] sm:$0xff]  ;;  %v85_v23 = vld [vmem:[#allocation5 + $0x150] sm:$0xff]  ;;  %v84_v24 = vld [vmem:[#allocation5 + $0x148] sm:$0xff] }
  0x38   :  { %171 = vmatpush1.xpose.msra.mxu0 %v59_v25  ;;  %241 = vmatprep.subr.mxu1 %v124_v35  ;;  %v83_v25 = vld [vmem:[#allocation5 + $0x140] sm:$0xff]  ;;  %v82_v26 = vld [vmem:[#allocation5 + $0x138] sm:$0xff]  ;;  %v80_v28 = vld [vmem:[#allocation5 + $0x128] sm:$0xff] }
  0x39   :  { %172 = vmatprep.subr.mxu0 %v58_v27  ;;  %v81_v27 = vld [vmem:[#allocation5 + $0x130] sm:$0xff]  ;;  %v78_v30 = vld [vmem:[#allocation5 + $0x118] sm:$0xff]  ;;  %v76_v32 = vld [vmem:[#allocation5 + $0x108] sm:$0xff] }
  0x3a   :  { %v75_v33 = vld [vmem:[#allocation5 + $0x100] sm:$0xff] }
  0x3b   :  { %242 = vmatpush1.xpose.msra.mxu1 %v123_v37  ;;  %v139_v37 = vld [vmem:[%s441_s2] sm:$0x7]  ;;  %s406_s2 = smov [#allocation7]  }
  0x3c   :  { %173 = vmatpush1.xpose.msra.mxu0 %v57_v29  ;;  %243 = vmatprep.subr.mxu1 %v122_v39  ;;  %v79_v29 = vld [vmem:[#allocation5 + $0x120] sm:$0xff]  ;;  %s315_s24 = sshll.u32 %s406_s2, 4  ;;  %s316_s24 = int_to_ptr.vmem [resolvable:$true] %s315_s24 }
  0x3d   :  { %174 = vmatprep.subr.mxu0 %v56_v31  ;;  %v77_v31 = vld [vmem:[#allocation5 + $0x110] sm:$0xff]  ;;  %s376_s25 = scalar_lea.vmem %s316_s24, 384  ;;  %p381_p11 = scmp.lt.s32.totalorder %s316_s24, %s316_s24 }
  0x3e   :  { %p377_p10 = scmp.ne.s32.totalorder %s316_s24, %s376_s25  ;;  %p382_p12 = scmp.lt.s32.totalorder %s376_s25, %s376_s25 }
  0x3f   :  { %244 = vmatpush1.xpose.msra.mxu1 %v121_v41 }
  0x40   :  { %175 = vmatpush1.xpose.msra.mxu0 %v55_v34  ;;  %245 = vmatprep.subr.mxu1 %v120_v43  ;;  %v141_v34 = vlaneseq  ;;  %p383_p13 = por %p382_p12, %p381_p11 }
  0x41   :  { %176 = vmatprep.subr.mxu0 %v54_v36 }
  0x42   :  { %v142_v35 = vshrl.u32 %v141_v34, 7  ;;  %p384_p0 = pnand %p383_p13, %p377_p10 }
  0x43   :  { %246 = vmatpush1.xpose.msra.mxu1 %v119_v45 }
  0x44   :  { %177 = vmatpush1.xpose.msra.mxu0 %v53_v38  ;;  %247 = vmatprep.subr.mxu1 %v118_v47  ;;  %v151_v36 = vsub.s32 2, %v142_v35  ;;  %v143_v45 = vsub.s32 0, %v142_v35 }
  0x45   :  { %178 = vmatprep.subr.mxu0 %v52_v40 }
  0x46   :  { %v152_v38 = vrot.slane %v139_v37, %v151_v36  ;;  %v144_v47 = vrot.slane %v139_v37, %v143_v45 }
  0x47   :  { %248 = vmatpush1.xpose.msra.mxu1 %v117_v49 }
  0x48   :  { %179 = vmatpush1.xpose.msra.mxu0 %v51_v42  ;;  %249 = vmatprep.subr.mxu1 %v116_v51 }
  0x49   :  { %180 = vmatprep.subr.mxu0 %v50_v44 }
  0x4b   :  { %250 = vmatpush1.xpose.msra.mxu1 %v115_v53 }
  0x4c   :  { %181 = vmatpush1.xpose.msra.mxu0 %v49_v46  ;;  %251 = vmatprep.subr.mxu1 %v114_v55  ;;  %v147_v46 = vsub.s32 1, %v142_v35 }
  0x4d   :  { %182 = vmatprep.subr.mxu0 %v48_v48 }
  0x4e   :  { %v148_v48 = vrot.slane %v139_v37, %v147_v46 }
  0x4f   :  { %252 = vmatpush1.xpose.msra.mxu1 %v113_v57 }
  0x50   :  { %183 = vmatpush1.xpose.msra.mxu0 %v47_v50  ;;  %253 = vmatprep.subr.mxu1 %v112_v59 }
  0x51   :  { %184 = vmatprep.subr.mxu0 %v46_v52 }
  0x53   :  { %254 = vmatpush1.xpose.msra.mxu1 %v111_v61 }
  0x54   :  { %185 = vmatpush1.xpose.msra.mxu0 %v45_v54  ;;  %255 = vmatprep.subr.mxu1 %v110_v63 }
  0x55   :  { %186 = vmatprep.subr.mxu0 %v44_v56 }
  0x57   :  { %256 = vmatpush1.xpose.msra.mxu1 %v109_v1 }
  0x58   :  { %187 = vmatpush1.xpose.msra.mxu0 %v43_v58  ;;  %257 = vmatprep.subr.mxu1 %v108_v3 }
  0x59   :  { %188 = vmatprep.subr.mxu0 %v106_v60 }
  0x5b   :  { %258 = vmatpush1.xpose.msra.mxu1 %v107_v5 }
  0x5c   :  { %189 = vmatpush2.xpose.msra.mxu0 %v105_v62 }
  0x5d   :  { %190 = vmatprep.subr.mxu0 %v104_v0 }
  0x5e   :  { %292 = vmatmul.mubr.f32.vlgmr.msra.gmra.mxu1 %v41_v8 }
  0x60   :  { %191 = vmatpush2.xpose.msra.mxu0 %v103_v2 }
  0x61   :  { %192 = vmatprep.subr.mxu0 %v102_v4 }
  0x64   :  { %193 = vmatpush2.xpose.msra.mxu0 %v101_v6 }
  0x65   :  { %194 = vmatprep.subr.mxu0 %v100_v7 }
  0x68   :  { %195 = vmatpush2.xpose.msra.mxu0 %v99_v9 }
  0x69   :  { %196 = vmatprep.subr.mxu0 %v98_v10 }
  0x6c   :  { %197 = vmatpush2.xpose.msra.mxu0 %v97_v11 }
  0x6d   :  { %198 = vmatprep.subr.mxu0 %v96_v12 }
  0x70   :  { %199 = vmatpush2.xpose.msra.mxu0 %v95_v13 }
  0x71   :  { %200 = vmatprep.subr.mxu0 %v94_v14 }
  0x74   :  { %201 = vmatpush2.xpose.msra.mxu0 %v93_v15 }
  0x75   :  { %202 = vmatprep.subr.mxu0 %v92_v16 }
  0x78   :  { %203 = vmatpush2.xpose.msra.mxu0 %v91_v17 }
  0x79   :  { %204 = vmatprep.subr.mxu0 %v90_v18 }
  0x7c   :  { %205 = vmatpush2.xpose.msra.mxu0 %v89_v19 }
  0x7d   :  { %206 = vmatprep.subr.mxu0 %v88_v20 }
  0x80   :  { %207 = vmatpush2.xpose.msra.mxu0 %v87_v21 }
  0x81   :  { %208 = vmatprep.subr.mxu0 %v86_v22 }
  0x84   :  { %209 = vmatpush2.xpose.msra.mxu0 %v85_v23 }
  0x85   :  { %210 = vmatprep.subr.mxu0 %v84_v24 }
  0x88   :  { %211 = vmatpush2.xpose.msra.mxu0 %v83_v25 }
  0x89   :  { %212 = vmatprep.subr.mxu0 %v82_v26 }
  0x8c   :  { %213 = vmatpush2.xpose.msra.mxu0 %v81_v27 }
  0x8d   :  { %214 = vmatprep.subr.mxu0 %v80_v28 }
  0x90   :  { %215 = vmatpush2.xpose.msra.mxu0 %v79_v29 }
  0x91   :  { %216 = vmatprep.subr.mxu0 %v78_v30 }
  0x94   :  { %217 = vmatpush2.xpose.msra.mxu0 %v77_v31 }
  0x95   :  { %218 = vmatprep.subr.mxu0 %v76_v32 }
  0x98   :  { %219 = vmatpush2.xpose.msra.mxu0 %v75_v33 }
  0x9b   :  { %221 = vmatmul.mubr.f32.vlgmr.msra.gmra.mxu0 %v41_v8 }
 0x11e   :  { %v293_v39 = vpop.f32.mrf.mxu1 }
 0x11f   :  { %v294_v40 = vadd.f32 %v293_v39, %v152_v38 }
 0x120   :  { %v295_v41 = vpop.f32.mrf.mxu1 }
 0x121   :  { %v299_v42 = vmul.f32 0.033333335, %v294_v40 }
 0x123   :  { %330 = vtanh.f32 %v299_v42 }
 0x130   :  { %v331_v43 = vpop.eup %330 }
 0x131   :  { %v305_v44 = vmul.f32 27.0, %v331_v43 }
 0x133   :  { %308 = vst [vmem:[#allocation7 + $0x10] sm:$0xff] %v305_v44 }
 0x15b   :  { %v222_v49 = vpop.f32.mrf.mxu0 }
 0x15c   :  { %v223_v50 = vadd.f32 %v222_v49, %v144_v47 }
 0x15d   :  { %v224_v51 = vpop.f32.mrf.mxu0 }
 0x15e   :  { %v297_v52 = vmul.f32 0.033333335, %v223_v50  ;;  %v225_v53 = vadd.f32 %v224_v51, %v148_v48 }
 0x160   :  { %332 = vtanh.f32 %v297_v52  ;;  %v298_v54 = vmul.f32 0.033333335, %v225_v53 }
 0x162   :  { %334 = vtanh.f32 %v298_v54 }
 0x16d   :  { %v333_v55 = vpop.eup %332 }
 0x16e   :  { %v303_v56 = vmul.f32 27.0, %v333_v55 }
 0x16f   :  { %v335_v57 = vpop.eup %334 }
 0x170   :  { %306 = vst [vmem:[#allocation7] sm:$0xff] %v303_v56  ;;  %v304_v58 = vmul.f32 27.0, %v335_v57 }
 0x172   :  { %307 = vst [vmem:[#allocation7 + $0x8] sm:$0xff] %v304_v58 }
 0x173   :  { %387 = shalt.err (!%p384_p0)
}
 0x174   :  { %318 = dma.vmem_to_hbm [thread:$0]  %s316_s24, 384, %s442_s3, [#allocation4]  }
 0x175   :  { %400 = dma.done.wait [#allocation4], 384  }
 0x176   :  { %401 = vsyncadd [#allocation4], 4294966912 }
 0x177   :  { %322 = vsyncpa [#allocation3], 1 }
 0x178   :  { %323 = vsyncpa [#allocation6], 1 }
 0x179   :  { %324 = vsyncpa [#allocation4], 1 }

</bundles_post_ra>
